<compile_context>
chip_gen: v5e
topology: v5e:2x2
jax: 0.10.0
libtpu: 0.0.40
codegen_flags: <defaults>
</compile_context>

<pallas_src>
import jax
import jax.numpy as jnp
from jax.experimental import pallas as pl
from jax.experimental.pallas import tpu as pltpu

OUT_PAD = 8  # layer-2 output columns padded 6 -> 8 (lane-light, store-friendly)


def mlp_kernel(x_ref, w1_ref, b1_ref, w2_ref, b2_ref, o_ref):
    # Layer 1: (tb, F) @ (F, F) + (1, F) -> sigmoid   (MXU matmul, f32 accum)
    h = jnp.dot(x_ref[...], w1_ref[...], preferred_element_type=jnp.float32)
    h = jax.nn.sigmoid(h + b1_ref[...])
    # Layer 2: (tb, F) @ (F, OUT_PAD) + (1, OUT_PAD) -> sigmoid
    y = jnp.dot(h, w2_ref[...], preferred_element_type=jnp.float32)
    o_ref[...] = jax.nn.sigmoid(y + b2_ref[...]).astype(o_ref.dtype)


def mlp_forward(x, w1, b1, w2, b2, *, block_b=512):
    """x: (B, F) f32; w1: (F, F); b1: (1, F); w2: (F, out_dim); b2: (1, out_dim)."""
    B, F = x.shape
    out_dim = w2.shape[1]

    # Zero-pad W2/b2 along the output dim to OUT_PAD columns. Padded columns
    # produce sigmoid(0) = 0.5 in the output and are sliced off below.
    w2p = jnp.zeros((F, OUT_PAD), w2.dtype).at[:, :out_dim].set(w2)
    b2p = jnp.zeros((1, OUT_PAD), b2.dtype).at[:, :out_dim].set(b2)

    # Batch tile: always a multiple of 8 (f32 sublane), capped at block_b and at
    # the (8-rounded) batch size so small batches use a single grid step.
    tb = min(max(block_b, 8), ((B + 7) // 8) * 8)
    tb = (tb // 8) * 8
    grid = (pl.cdiv(B, tb),)  # ragged last block: OOB reads/writes handled by Pallas

    # Rough scoped-VMEM budget: double-buffered x/out tiles + (double-buffered)
    # resident weights, with a 16 MiB floor and 64 MiB cap (safe on v5e/v6e/v7x).
    itemsize = jnp.dtype(jnp.float32).itemsize
    est = itemsize * (
        2 * tb * F                                   # x tile, 2 buffers
        + 2 * tb * OUT_PAD                           # out tile, 2 buffers
        + 2 * (F * F + F + F * OUT_PAD + OUT_PAD)    # weights/biases, 2 buffers
    )
    vmem_limit = int(min(64 * 1024 * 1024, max(16 * 1024 * 1024, 2 * est)))

    out = pl.pallas_call(
        mlp_kernel,
        out_shape=jax.ShapeDtypeStruct((B, OUT_PAD), jnp.float32),
        grid_spec=pltpu.PrefetchScalarGridSpec(
            num_scalar_prefetch=0,
            grid=grid,
            in_specs=[
                pl.BlockSpec((tb, F), lambda i: (i, 0)),        # x: streamed per tile
                pl.BlockSpec((F, F), lambda i: (0, 0)),         # W1: resident
                pl.BlockSpec((1, F), lambda i: (0, 0)),         # b1: resident
                pl.BlockSpec((F, OUT_PAD), lambda i: (0, 0)),   # W2 (padded): resident
                pl.BlockSpec((1, OUT_PAD), lambda i: (0, 0)),   # b2 (padded): resident
            ],
            out_specs=pl.BlockSpec((tb, OUT_PAD), lambda i: (i, 0)),
        ),
        compiler_params=pltpu.CompilerParams(
            dimension_semantics=("parallel",),
            vmem_limit_bytes=vmem_limit,
        ),
    )(x, w1, b1, w2p, b2p)

    # Drop only the padded columns (no batch padding to trim).
    return out[:, :out_dim]


if __name__ == "__main__":
    key = jax.random.PRNGKey(0)
    batch = 100
    n_features = 32
    out_dim = 6

    k_x, k_w1, k_b1, k_w2, k_b2 = jax.random.split(key, 5)

    x = jax.random.normal(k_x, (batch, n_features), dtype=jnp.float32)

    # PyTorch-like uniform init: U(-1/sqrt(fan_in), 1/sqrt(fan_in))
    bound1 = 1.0 / jnp.sqrt(jnp.float32(n_features))
    w1 = jax.random.uniform(k_w1, (n_features, n_features), jnp.float32, -bound1, bound1)
    b1 = jax.random.uniform(k_b1, (1, n_features), jnp.float32, -bound1, bound1)

    bound2 = 1.0 / jnp.sqrt(jnp.float32(n_features))
    w2 = jax.random.uniform(k_w2, (n_features, out_dim), jnp.float32, -bound2, bound2)
    b2 = jax.random.uniform(k_b2, (1, out_dim), jnp.float32, -bound2, bound2)

    ref = jax.nn.sigmoid(jax.nn.sigmoid(x @ w1 + b1) @ w2 + b2)

    # Path 1: default tile -> single grid step at this demo size (tb = 104).
    out1 = mlp_forward(x, w1, b1, w2, b2)
    jax.block_until_ready(out1)
    assert out1.shape == (batch, out_dim), f"bad shape {out1.shape}"
    assert jnp.allclose(out1, ref, atol=1e-5), "mismatch vs reference (single-tile path)"

    # Path 2: smaller tile -> multi-step grid with a ragged last block.
    out2 = mlp_forward(x, w1, b1, w2, b2, block_b=64)
    jax.block_until_ready(out2)
    assert out2.shape == (batch, out_dim), f"bad shape {out2.shape}"
    assert jnp.allclose(out2, ref, atol=1e-5), "mismatch vs reference (multi-tile path)"

    print("KERNEL_OK")
</pallas_src>

<mosaic_0001>
module attributes {stable_mosaic.version = 11 : i64} {
  func.func @mlp_kernel(%arg0: i32, %arg1: memref<104x32xf32, #tpu.memory_space<vmem>>, %arg2: memref<32x32xf32, #tpu.memory_space<vmem>>, %arg3: memref<1x32xf32, #tpu.memory_space<vmem>>, %arg4: memref<32x8xf32, #tpu.memory_space<vmem>>, %arg5: memref<1x8xf32, #tpu.memory_space<vmem>>, %arg6: memref<104x8xf32, #tpu.memory_space<vmem>>) attributes {dimension_semantics = [#tpu.dimension_semantics<parallel>], iteration_bounds = array<i64: 1>, scalar_prefetch = 0 : i64, scratch_operands = 0 : i64, tpu.core_type = #tpu.core_type<tc>, window_params = [{transform_indices = @transform_0, window_bounds = array<i64: 104, 32>}, {pipeline_mode = #tpu.pipeline_mode<synchronous>, transform_indices = @transform_1, window_bounds = array<i64: 32, 32>}, {pipeline_mode = #tpu.pipeline_mode<synchronous>, transform_indices = @transform_2, window_bounds = array<i64: 1, 32>}, {pipeline_mode = #tpu.pipeline_mode<synchronous>, transform_indices = @transform_3, window_bounds = array<i64: 32, 8>}, {pipeline_mode = #tpu.pipeline_mode<synchronous>, transform_indices = @transform_4, window_bounds = array<i64: 1, 8>}, {transform_indices = @transform_5, window_bounds = array<i64: 104, 8>}]} {
    %c0 = arith.constant 0 : index
    %c0_0 = arith.constant 0 : index
    %0 = vector.load %arg1[%c0, %c0_0] : memref<104x32xf32, #tpu.memory_space<vmem>>, vector<104x32xf32>
    %c0_1 = arith.constant 0 : index
    %c0_2 = arith.constant 0 : index
    %1 = vector.load %arg2[%c0_1, %c0_2] : memref<32x32xf32, #tpu.memory_space<vmem>>, vector<32x32xf32>
    %cst = arith.constant dense<0.000000e+00> : vector<104x32xf32>
    %2 = tpu.matmul %0, %1, %cst {dimension_numbers = #tpu.dot_dimension_numbers<[1], [0], [0], [1], [0, 0, 1, 1], [], []>} : vector<104x32xf32>, vector<32x32xf32>, vector<104x32xf32> -> vector<104x32xf32>
    %c0_3 = arith.constant 0 : index
    %c0_4 = arith.constant 0 : index
    %3 = vector.load %arg3[%c0_3, %c0_4] : memref<1x32xf32, #tpu.memory_space<vmem>>, vector<1x32xf32>
    %4 = vector.broadcast %3 : vector<1x32xf32> to vector<104x32xf32>
    %5 = arith.addf %2, %4 : vector<104x32xf32>
    %6 = arith.negf %5 : vector<104x32xf32>
    %7 = math.exp %6 : vector<104x32xf32>
    %cst_5 = arith.constant 1.000000e+00 : f32
    %8 = vector.broadcast %cst_5 : f32 to vector<104x32xf32>
    %9 = arith.addf %8, %7 : vector<104x32xf32>
    %10 = arith.divf %8, %9 : vector<104x32xf32>
    %c0_6 = arith.constant 0 : index
    %c0_7 = arith.constant 0 : index
    %11 = vector.load %arg4[%c0_6, %c0_7] : memref<32x8xf32, #tpu.memory_space<vmem>>, vector<32x8xf32>
    %cst_8 = arith.constant dense<0.000000e+00> : vector<104x8xf32>
    %12 = tpu.matmul %10, %11, %cst_8 {dimension_numbers = #tpu.dot_dimension_numbers<[1], [0], [0], [1], [0, 0, 1, 1], [], []>} : vector<104x32xf32>, vector<32x8xf32>, vector<104x8xf32> -> vector<104x8xf32>
    %c0_9 = arith.constant 0 : index
    %c0_10 = arith.constant 0 : index
    %13 = vector.load %arg5[%c0_9, %c0_10] : memref<1x8xf32, #tpu.memory_space<vmem>>, vector<1x8xf32>
    %14 = vector.broadcast %13 : vector<1x8xf32> to vector<104x8xf32>
    %15 = arith.addf %12, %14 : vector<104x8xf32>
    %16 = arith.negf %15 : vector<104x8xf32>
    %17 = math.exp %16 : vector<104x8xf32>
    %cst_11 = arith.constant 1.000000e+00 : f32
    %18 = vector.broadcast %cst_11 : f32 to vector<104x8xf32>
    %19 = arith.addf %18, %17 : vector<104x8xf32>
    %20 = arith.divf %18, %19 : vector<104x8xf32>
    %c0_12 = arith.constant 0 : index
    %c0_13 = arith.constant 0 : index
    %21 = vector.load %arg6[%c0_12, %c0_13] : memref<104x8xf32, #tpu.memory_space<vmem>>, vector<104x8xf32>
    tpu.vector_store %arg6[%c0_12, %c0_13], %20 {strides = array<i32>} : memref<104x8xf32, #tpu.memory_space<vmem>>, vector<104x8xf32>,
    return
  }
  func.func @transform_0(%arg0: i32) -> (i32, i32) {
    %c0_i32 = arith.constant 0 : i32
    %c0_i32_0 = arith.constant 0 : i32
    return %arg0, %c0_i32 : i32, i32
  }
  func.func @transform_1(%arg0: i32) -> (i32, i32) {
    %c0_i32 = arith.constant 0 : i32
    %c0_i32_0 = arith.constant 0 : i32
    %c0_i32_1 = arith.constant 0 : i32
    return %c0_i32, %c0_i32_0 : i32, i32
  }
  func.func @transform_2(%arg0: i32) -> (i32, i32) {
    %c0_i32 = arith.constant 0 : i32
    %c0_i32_0 = arith.constant 0 : i32
    %c0_i32_1 = arith.constant 0 : i32
    return %c0_i32, %c0_i32_0 : i32, i32
  }
  func.func @transform_3(%arg0: i32) -> (i32, i32) {
    %c0_i32 = arith.constant 0 : i32
    %c0_i32_0 = arith.constant 0 : i32
    %c0_i32_1 = arith.constant 0 : i32
    return %c0_i32, %c0_i32_0 : i32, i32
  }
  func.func @transform_4(%arg0: i32) -> (i32, i32) {
    %c0_i32 = arith.constant 0 : i32
    %c0_i32_0 = arith.constant 0 : i32
    %c0_i32_1 = arith.constant 0 : i32
    return %c0_i32, %c0_i32_0 : i32, i32
  }
  func.func @transform_5(%arg0: i32) -> (i32, i32) {
    %c0_i32 = arith.constant 0 : i32
    %c0_i32_0 = arith.constant 0 : i32
    return %arg0, %c0_i32 : i32, i32
  }
}

</mosaic_0001>

<bundles_post_ra>
// kernel: tpu_custom_call.1
= control target key start
LH: loop header
LB: loop body
LE: loop exit
PB: predicated region body
PF: predicated region fallthrough
CT: control target
= control target key end

     0   :  { %vm41_vm0 = vcmask 261120   ;;  %s1364_s1 = inlined_call_operand.vmem [shape: f32[32,32], index: 1, kind: input, shape index: {}]   ;;  %s1365_s0 = inlined_call_operand.vmem [shape: f32[100,32], index: 0, kind: input, shape index: {}]   ;;  %s1366_s2 = inlined_call_operand.vmem [shape: f32[1,32], index: 2, kind: input, shape index: {}]   ;;  %s1367_s4 = inlined_call_operand.vmem [shape: f32[1,8], index: 4, kind: input, shape index: {}]   ;;  %s1368_s3 = inlined_call_operand.vmem [shape: f32[32,8], index: 3, kind: input, shape index: {}]   ;;  %s1369_s5 = inlined_call_operand.vmem [shape: f32[100,8], index: 5, kind: output, shape index: {}]  }
   0x1   :  { %v36_v0 = vld [vmem:[%s1364_s1 + $0x18] sm:$0xff]  ;;  %v35_v1 = vld [vmem:[%s1364_s1 + $0x10] sm:$0xff]  ;;  %v34_v2 = vld [vmem:[%s1364_s1 + $0x8] sm:$0xff] }
   0x2   :  { %93 = vmatpush.msra.mxu0 %v36_v0  ;;  %804 = vmatpush.msra.mxu2 %v36_v0  ;;  %v33_v3 = vld [vmem:[%s1364_s1] sm:$0xff]  ;;  %v27_v5 = vld [vmem:[%s1365_s0 + $0x38] sm:$0xff]  ;;  %v21_v6 = vld [vmem:[%s1365_s0 + $0x8] sm:$0xff] }
   0x3   :  { %v20_v4 = vld [vmem:[%s1365_s0] sm:$0xff]  ;;  %v22_v8 = vld [vmem:[%s1365_s0 + $0x10] sm:$0xff]  ;;  %v29_v9 = vld [vmem:[%s1365_s0 + $0x48] sm:$0xff] }
   0x4   :  { %94 = vmatpush.msra.mxu0 %v35_v1  ;;  %805 = vmatpush.msra.mxu2 %v35_v1  ;;  %v28_v7 = vld [vmem:[%s1365_s0 + $0x40] sm:$0xff]  ;;  %v23_v10 = vld [vmem:[%s1365_s0 + $0x18] sm:$0xff]  ;;  %v30_v11 = vld [vmem:[%s1365_s0 + $0x50] sm:$0xff] }
   0x5   :  { %v24_v12 = vld [vmem:[%s1365_s0 + $0x20] sm:$0xff]  ;;  %v31_v13 = vld [vmem:[%s1365_s0 + $0x58] sm:$0xff]  ;;  %v25_v14 = vld [vmem:[%s1365_s0 + $0x28] sm:$0xff] }
   0x6   :  { %95 = vmatpush.msra.mxu0 %v34_v2  ;;  %806 = vmatpush.msra.mxu2 %v34_v2  ;;  %v32_v15 = vld [vmem:[%s1365_s0 + $0x60] sm:$0xff]  ;;  %v26_v16 = vld [vmem:[%s1365_s0 + $0x30] sm:$0xff]  ;;  %v387_v17 = vld [vmem:[%s1368_s3 + $0x18] sm:$0xff] }
   0x7   :  { %443 = vmatpush.msra.mxu1 %v387_v17  ;;  %808 = vmatpush.msra.mxu3 %v387_v17  ;;  %v386_v18 = vld [vmem:[%s1368_s3 + $0x10] sm:$0xff]  ;;  %v385_v19 = vld [vmem:[%s1368_s3 + $0x8] sm:$0xff]  ;;  %v1024_v20 = vld [vmem:[%s1366_s2] ss:$0 sm:$0xff] }
   0x8   :  { %96 = vmatpush.msra.mxu0 %v33_v3  ;;  %807 = vmatpush.msra.mxu2 %v33_v3  ;;  %v384_v21 = vld [vmem:[%s1368_s3] sm:$0xff] }
   0x9   :  { %752 = vmatmul.msk.f32.vlgmr.msra.gmra.mxu0 %vm41_vm0, %v20_v4  ;;  %759 = vmatmul.msk.f32.vlgmr.msra.gmra.mxu2 %vm41_vm0, %v27_v5 }
   0xa   :  { %444 = vmatpush.msra.mxu1 %v386_v18  ;;  %809 = vmatpush.msra.mxu3 %v386_v18 }
   0xc   :  { %445 = vmatpush.msra.mxu1 %v385_v19  ;;  %810 = vmatpush.msra.mxu3 %v385_v19 }
   0xe   :  { %446 = vmatpush.msra.mxu1 %v384_v21  ;;  %811 = vmatpush.msra.mxu3 %v384_v21 }
  0x11   :  { %753 = vmatmul.msk.f32.gmra.mxu0 %vm41_vm0, %v21_v6  ;;  %760 = vmatmul.msk.f32.gmra.mxu2 %vm41_vm0, %v28_v7 }
  0x19   :  { %754 = vmatmul.msk.f32.gmra.mxu0 %vm41_vm0, %v22_v8  ;;  %761 = vmatmul.msk.f32.gmra.mxu2 %vm41_vm0, %v29_v9 }
  0x21   :  { %755 = vmatmul.msk.f32.gmra.mxu0 %vm41_vm0, %v23_v10  ;;  %762 = vmatmul.msk.f32.gmra.mxu2 %vm41_vm0, %v30_v11 }
  0x29   :  { %756 = vmatmul.msk.f32.gmra.mxu0 %vm41_vm0, %v24_v12  ;;  %763 = vmatmul.msk.f32.gmra.mxu2 %vm41_vm0, %v31_v13 }
  0x31   :  { %757 = vmatmul.msk.f32.gmra.mxu0 %vm41_vm0, %v25_v14  ;;  %764 = vmatmul.msk.f32.gmra.mxu2 %vm41_vm0, %v32_v15 }
  0x39   :  { %758 = vmatmul.msk.f32.gmra.mxu0 %vm41_vm0, %v26_v16 }
  0x86   :  { %v98_v22 = vpop.f32.mrf.mxu0 }
  0x87   :  { %v99_v23 = vadd.f32 %v1024_v20, %v98_v22 }
  0x89   :  { %v765_v24 = vmul.f32 -1.442695, %v99_v23 }
  0x8b   :  { %814 = vpow2.f32 %v765_v24 }
  0x8c   :  { %v119_v25 = vpop.f32.mrf.mxu2 }
  0x8d   :  { %v120_v26 = vadd.f32 %v1024_v20, %v119_v25 }
  0x8e   :  { %v101_v27 = vpop.f32.mrf.mxu0 }
  0x8f   :  { %v772_v28 = vmul.f32 -1.442695, %v120_v26  ;;  %v102_v29 = vadd.f32 %v1024_v20, %v101_v27 }
  0x91   :  { %v815_v30 = vpop.eup %814  ;;  %816 = vpow2.f32 %v772_v28  ;;  %v766_v31 = vmul.f32 -1.442695, %v102_v29 }
  0x92   :  { %v176_v32 = vadd.f32 1.0, %v815_v30 }
  0x93   :  { %818 = vpow2.f32 %v766_v31 }
  0x94   :  { %820 = vrcp.f32 %v176_v32  ;;  %v122_v33 = vpop.f32.mrf.mxu2  ;;  %v198_v44 = vand.u32 2147483647, %v176_v32  ;;  %v200_v45 = vand.u32 2147483648, %v176_v32  ;;  %vm194_vm1 = vweird.f32 %v176_v32 }
  0x95   :  { %v123_v34 = vadd.f32 %v1024_v20, %v122_v33 }
  0x96   :  { %v104_v35 = vpop.f32.mrf.mxu0  ;;  %vm1041_vm2 = vcmp.eq.f32.partialorder %v198_v44, 8.507059e+37  ;;  %v201_v52 = vor.u32 1.1754944e-38, %v200_v45 }
  0x97   :  { %v817_v36 = vpop.eup %816  ;;  %v773_v37 = vmul.f32 -1.442695, %v123_v34  ;;  %v105_v38 = vadd.f32 %v1024_v20, %v104_v35 }
  0x98   :  { %v1034_v39 = vadd.f32 1.0, %v817_v36 }
  0x99   :  { %v819_v40 = vpop.eup %818  ;;  %822 = vpow2.f32 %v773_v37  ;;  %v767_v41 = vmul.f32 -1.442695, %v105_v38 }
  0x9a   :  { %v821_v42 = vpop.eup %820  ;;  %824 = vrcp.f32 %v1034_v39  ;;  %v1037_v43 = vadd.f32 1.0, %v819_v40  ;;  %vm299_vm4 = vweird.f32 %v1034_v39  ;;  %v303_v59 = vand.u32 2147483647, %v1034_v39 }
  0x9b   :  { %826 = vpow2.f32 %v767_v41  ;;  %v190_v46 = vmul.f32 %v821_v42, %v176_v32  ;;  %vm195_vm3 = vweird.f32 %v821_v42  ;;  %v305_v60 = vand.u32 2147483648, %v1034_v39 }
  0x9c   :  { %828 = vrcp.f32 %v1037_v43  ;;  %v125_v47 = vpop.f32.mrf.mxu2  ;;  %vm196_vm5 = vmor %vm194_vm1, %vm195_vm3  ;;  %v213_v3 = vand.u32 2147483647, %v1037_v43  ;;  %v215_v4 = vand.u32 2147483648, %v1037_v43  ;;  %vm1062_vm6 = vcmp.eq.f32.partialorder %v303_v59, 8.507059e+37 }
  0x9d   :  { %v126_v48 = vadd.f32 %v1024_v20, %v125_v47  ;;  %v191_v49 = vsub.f32 1.0, %v190_v46  ;;  %vm209_vm7 = vweird.f32 %v1037_v43  ;;  %v306_v15 = vor.u32 1.1754944e-38, %v305_v60 }
  0x9e   :  { %v107_v50 = vpop.f32.mrf.mxu0  ;;  %vm1069_vm10 = vcmp.eq.f32.partialorder %v213_v3, 8.507059e+37  ;;  %v216_v17 = vor.u32 1.1754944e-38, %v215_v4 }
  0x9f   :  { %v823_v53 = vpop.eup %822  ;;  %v774_v54 = vmul.f32 -1.442695, %v126_v48  ;;  %v108_v55 = vadd.f32 %v1024_v20, %v107_v50  ;;  %v192_v56 = vmul.f32 %v821_v42, %v191_v49 }
  0xa0   :  { %v825_v57 = vpop.eup %824  ;;  %v1046_v58 = vadd.f32 1.0, %v823_v53 }
  0xa1   :  { %v827_v61 = vpop.eup %826  ;;  %830 = vpow2.f32 %v774_v54  ;;  %v768_v62 = vmul.f32 -1.442695, %v108_v55  ;;  %v193_v63 = vadd.f32 %v821_v42, %v192_v56  ;;  %v295_v0 = vmul.f32 %v825_v57, %v1034_v39 }
  0xa2   :  { %v829_v1 = vpop.eup %828  ;;  %832 = vrcp.f32 %v1046_v58  ;;  %v1053_v2 = vadd.f32 1.0, %v827_v61  ;;  %vm300_vm8 = vweird.f32 %v825_v57  ;;  %v318_v26 = vand.u32 2147483647, %v1046_v58 }
  0xa3   :  { %834 = vpow2.f32 %v768_v62  ;;  %v197_v5 = vsel %vm196_vm5, %v821_v42, %v193_v63  ;;  %v296_v6 = vsub.f32 1.0, %v295_v0  ;;  %v205_v7 = vmul.f32 %v829_v1, %v1037_v43  ;;  %vm301_vm11 = vmor %vm299_vm4, %vm300_vm8 }
  0xa4   :  { %836 = vrcp.f32 %v1053_v2  ;;  %v128_v8 = vpop.f32.mrf.mxu2  ;;  %v202_v9 = vsel %vm1041_vm2, %v201_v52, %v197_v5  ;;  %vm210_vm9 = vweird.f32 %v829_v1  ;;  %v320_v27 = vand.u32 2147483648, %v1046_v58 }
  0xa5   :  { %v129_v11 = vadd.f32 %v1024_v20, %v128_v8  ;;  %778 = vmatmul.msk.f32.vlgmr.msra.gmra.mxu1 %vm41_vm0, %v202_v9  ;;  %v297_v12 = vmul.f32 %v825_v57, %v296_v6  ;;  %v206_v13 = vsub.f32 1.0, %v205_v7  ;;  %v228_v28 = vand.u32 2147483647, %v1053_v2  ;;  %vm211_vm12 = vmor %vm209_vm7, %vm210_vm9 }
  0xa6   :  { %v110_v14 = vpop.f32.mrf.mxu0  ;;  %vm314_vm13 = vweird.f32 %v1046_v58  ;;  %v230_v42 = vand.u32 2147483648, %v1053_v2  ;;  %vm1099_vm14 = vcmp.eq.f32.partialorder %v318_v26, 8.507059e+37  ;;  %vm224_vm15 = vweird.f32 %v1053_v2 }
  0xa7   :  { %v831_v18 = vpop.eup %830  ;;  %v775_v19 = vmul.f32 -1.442695, %v129_v11  ;;  %v111_v21 = vadd.f32 %v1024_v20, %v110_v14  ;;  %v298_v22 = vadd.f32 %v825_v57, %v297_v12  ;;  %v207_v23 = vmul.f32 %v829_v1, %v206_v13 }
  0xa8   :  { %v833_v24 = vpop.eup %832  ;;  %v1074_v25 = vadd.f32 1.0, %v831_v18  ;;  %v321_v48 = vor.u32 1.1754944e-38, %v320_v27  ;;  %vm1104_vm2 = vcmp.eq.f32.partialorder %v228_v28, 8.507059e+37 }
  0xa9   :  { %v835_v29 = vpop.eup %834  ;;  %838 = vpow2.f32 %v775_v19  ;;  %v769_v30 = vmul.f32 -1.442695, %v111_v21  ;;  %v302_v31 = vsel %vm301_vm11, %v825_v57, %v298_v22  ;;  %v208_v32 = vadd.f32 %v829_v1, %v207_v23 }
  0xaa   :  { %v837_v33 = vpop.eup %836  ;;  %840 = vrcp.f32 %v1074_v25  ;;  %v1082_v34 = vadd.f32 1.0, %v835_v29  ;;  %v307_v35 = vsel %vm1062_vm6, %v306_v15, %v302_v31  ;;  %v310_v36 = vmul.f32 %v833_v24, %v1046_v58 }
  0xab   :  { %842 = vpow2.f32 %v769_v30  ;;  %785 = vmatmul.msk.f32.vlgmr.msra.gmra.mxu3 %vm41_vm0, %v307_v35  ;;  %v212_v37 = vsel %vm211_vm12, %v829_v1, %v208_v32  ;;  %v220_v38 = vmul.f32 %v837_v33, %v1053_v2  ;;  %vm315_vm1 = vweird.f32 %v833_v24 }
  0xac   :  { %844 = vrcp.f32 %v1082_v34  ;;  %v131_v39 = vpop.f32.mrf.mxu2  ;;  %v217_v40 = vsel %vm1069_vm10, %v216_v17, %v212_v37  ;;  %v311_v41 = vsub.f32 1.0, %v310_v36  ;;  %vm225_vm3 = vweird.f32 %v837_v33  ;;  %vm316_vm4 = vmor %vm314_vm13, %vm315_vm1 }
  0xad   :  { %v132_v43 = vadd.f32 %v1024_v20, %v131_v39  ;;  %779 = vmatmul.msk.f32.gmra.mxu1 %vm41_vm0, %v217_v40  ;;  %v221_v45 = vsub.f32 1.0, %v220_v38  ;;  %v231_v57 = vor.u32 1.1754944e-38, %v230_v42  ;;  %v333_v59 = vand.u32 2147483647, %v1074_v25  ;;  %vm226_vm5 = vmor %vm224_vm15, %vm225_vm3 }
  0xae   :  { %v113_v46 = vpop.f32.mrf.mxu0  ;;  %v312_v47 = vmul.f32 %v833_v24, %v311_v41  ;;  %v335_v4 = vand.u32 2147483648, %v1074_v25  ;;  %v243_v2 = vand.u32 2147483647, %v1082_v34  ;;  %vm329_vm6 = vweird.f32 %v1074_v25 }
  0xaf   :  { %v839_v50 = vpop.eup %838  ;;  %v776_v51 = vmul.f32 -1.442695, %v132_v43  ;;  %v114_v52 = vadd.f32 %v1024_v20, %v113_v46  ;;  %v222_v53 = vmul.f32 %v837_v33, %v221_v45  ;;  %vm1134_vm8 = vcmp.eq.f32.partialorder %v333_v59, 8.507059e+37 }
  0xb0   :  { %v841_v54 = vpop.eup %840  ;;  %v1109_v55 = vadd.f32 1.0, %v839_v50  ;;  %v313_v56 = vadd.f32 %v833_v24, %v312_v47  ;;  %v336_v14 = vor.u32 1.1754944e-38, %v335_v4  ;;  %vm239_vm9 = vweird.f32 %v1082_v34 }
  0xb1   :  { %v843_v60 = vpop.eup %842  ;;  %846 = vpow2.f32 %v776_v51  ;;  %v770_v61 = vmul.f32 -1.442695, %v114_v52  ;;  %v223_v62 = vadd.f32 %v837_v33, %v222_v53  ;;  %v325_v63 = vmul.f32 %v841_v54, %v1074_v25 }
  0xb2   :  { %v845_v0 = vpop.eup %844  ;;  %848 = vrcp.f32 %v1109_v55  ;;  %v1117_v1 = vadd.f32 1.0, %v843_v60  ;;  %v317_v3 = vsel %vm316_vm4, %v833_v24, %v313_v56  ;;  %vm330_vm7 = vweird.f32 %v841_v54 }
  0xb3   :  { %850 = vpow2.f32 %v770_v61  ;;  %v322_v58 = vsel %vm1099_vm14, %v321_v48, %v317_v3  ;;  %v227_v5 = vsel %vm226_vm5, %v837_v33, %v223_v62  ;;  %v326_v6 = vsub.f32 1.0, %v325_v63  ;;  %vm331_vm10 = vmor %vm329_vm6, %vm330_vm7 }
  0xb4   :  { %852 = vrcp.f32 %v1117_v1  ;;  %786 = vmatmul.msk.f32.gmra.mxu3 %vm41_vm0, %v322_v58  ;;  %v134_v7 = vpop.f32.mrf.mxu2  ;;  %v232_v8 = vsel %vm1104_vm2, %v231_v57, %v227_v5  ;;  %v235_v9 = vmul.f32 %v845_v0, %v1082_v34  ;;  %v245_v21 = vand.u32 2147483648, %v1082_v34 }
  0xb5   :  { %v135_v10 = vadd.f32 %v1024_v20, %v134_v7  ;;  %780 = vmatmul.msk.f32.gmra.mxu1 %vm41_vm0, %v232_v8  ;;  %v327_v11 = vmul.f32 %v841_v54, %v326_v6  ;;  %vm240_vm11 = vweird.f32 %v845_v0  ;;  %vm1143_vm12 = vcmp.eq.f32.partialorder %v243_v2, 8.507059e+37 }
  0xb6   :  { %v116_v12 = vpop.f32.mrf.mxu0  ;;  %v236_v15 = vsub.f32 1.0, %v235_v9  ;;  %vm241_vm13 = vmor %vm239_vm9, %vm240_vm11  ;;  %v246_v33 = vor.u32 1.1754944e-38, %v245_v21  ;;  %v348_v38 = vand.u32 2147483647, %v1109_v55  ;;  %v350_v39 = vand.u32 2147483648, %v1109_v55 }
  0xb7   :  { %v847_v16 = vpop.eup %846  ;;  %v777_v17 = vmul.f32 -1.442695, %v135_v10  ;;  %v117_v18 = vadd.f32 %v1024_v20, %v116_v12  ;;  %v328_v19 = vadd.f32 %v841_v54, %v327_v11  ;;  %vm344_vm15 = vweird.f32 %v1109_v55 }
  0xb8   :  { %v849_v22 = vpop.eup %848  ;;  %v1141_v23 = vadd.f32 1.0, %v847_v16  ;;  %v237_v24 = vmul.f32 %v845_v0, %v236_v15  ;;  %v260_v42 = vand.u32 2147483648, %v1117_v1  ;;  %v258_v46 = vand.u32 2147483647, %v1117_v1 }
  0xb9   :  { %v851_v26 = vpop.eup %850  ;;  %854 = vpow2.f32 %v777_v17  ;;  %v771_v27 = vmul.f32 -1.442695, %v117_v18  ;;  %v332_v28 = vsel %vm331_vm10, %v841_v54, %v328_v19  ;;  %v340_v29 = vmul.f32 %v849_v22, %v1109_v55 }
  0xba   :  { %v853_v20 = vpop.eup %852  ;;  %856 = vrcp.f32 %v1141_v23  ;;  %v1149_v30 = vadd.f32 1.0, %v851_v26  ;;  %v337_v31 = vsel %vm1134_vm8, %v336_v14, %v332_v28  ;;  %v238_v32 = vadd.f32 %v845_v0, %v237_v24 }
  0xbb   :  { %858 = vpow2.f32 %v771_v27  ;;  %v341_v35 = vsub.f32 1.0, %v340_v29  ;;  %v250_v36 = vmul.f32 %v853_v20, %v1117_v1  ;;  %vm345_vm14 = vweird.f32 %v849_v22 }
  0xbc   :  { %860 = vrcp.f32 %v1149_v30  ;;  %787 = vmatmul.msk.f32.gmra.mxu3 %vm41_vm0, %v337_v31  ;;  %v242_v37 = vsel %vm241_vm13, %v845_v0, %v238_v32  ;;  %vm255_vm1 = vweird.f32 %v853_v20  ;;  %vm346_vm2 = vmor %vm344_vm15, %vm345_vm14  ;;  %v351_v49 = vor.u32 1.1754944e-38, %v350_v39 }
  0xbd   :  { %v247_v40 = vsel %vm1143_vm12, %v246_v33, %v242_v37  ;;  %v342_v41 = vmul.f32 %v849_v22, %v341_v35  ;;  %v251_v34 = vsub.f32 1.0, %v250_v36  ;;  %vm254_vm3 = vweird.f32 %v1117_v1  ;;  %v1199_v33 = vld [vmem:[%s1367_s4] ss:$0 sm:$0xff] }
  0xbe   :  { %781 = vmatmul.msk.f32.gmra.mxu1 %vm41_vm0, %v247_v40  ;;  %vm349_vm4 = vcmp.eq.f32.partialorder %v348_v38, 8.507059e+37  ;;  %vm256_vm5 = vmor %vm254_vm3, %vm255_vm1  ;;  %v261_v57 = vor.u32 1.1754944e-38, %v260_v42  ;;  %vm259_vm6 = vcmp.eq.f32.partialorder %v258_v46, 8.507059e+37  ;;  %v365_v63 = vand.u32 2147483648, %v1141_v23 }
  0xbf   :  { %v855_v43 = vpop.eup %854  ;;  %v343_v44 = vadd.f32 %v849_v22, %v342_v41  ;;  %v252_v45 = vmul.f32 %v853_v20, %v251_v34  ;;  %v363_v1 = vand.u32 2147483647, %v1141_v23  ;;  %vm359_vm8 = vweird.f32 %v1141_v23 }
  0xc0   :  { %v857_v47 = vpop.eup %856  ;;  %v1166_v48 = vadd.f32 1.0, %v855_v43  ;;  %v275_v4 = vand.u32 2147483648, %v1149_v30  ;;  %v273_v6 = vand.u32 2147483647, %v1149_v30  ;;  %v366_v8 = vor.u32 1.1754944e-38, %v365_v63 }
  0xc1   :  { %v859_v50 = vpop.eup %858  ;;  %v347_v51 = vsel %vm346_vm2, %v849_v22, %v343_v44  ;;  %v253_v52 = vadd.f32 %v853_v20, %v252_v45  ;;  %v355_v53 = vmul.f32 %v857_v47, %v1141_v23  ;;  %vm360_vm7 = vweird.f32 %v857_v47 }
  0xc2   :  { %v861_v54 = vpop.eup %860  ;;  %862 = vrcp.f32 %v1166_v48  ;;  %v1171_v55 = vadd.f32 1.0, %v859_v50  ;;  %v352_v56 = vsel %vm349_vm4, %v351_v49, %v347_v51  ;;  %vm361_vm10 = vmor %vm359_vm8, %vm360_vm7  ;;  %vm269_vm11 = vweird.f32 %v1149_v30 }
  0xc3   :  { %v257_v59 = vsel %vm256_vm5, %v853_v20, %v253_v52  ;;  %v356_v60 = vsub.f32 1.0, %v355_v53  ;;  %v265_v61 = vmul.f32 %v861_v54, %v1149_v30  ;;  %vm270_vm9 = vweird.f32 %v861_v54 }
  0xc4   :  { %864 = vrcp.f32 %v1171_v55  ;;  %788 = vmatmul.msk.f32.gmra.mxu3 %vm41_vm0, %v352_v56  ;;  %v262_v62 = vsel %vm259_vm6, %v261_v57, %v257_v59  ;;  %vm364_vm12 = vcmp.eq.f32.partialorder %v363_v1, 8.507059e+37  ;;  %vm271_vm13 = vmor %vm269_vm11, %vm270_vm9  ;;  %v276_v13 = vor.u32 1.1754944e-38, %v275_v4 }
  0xc5   :  { %v357_v0 = vmul.f32 %v857_v47, %v356_v60  ;;  %v266_v3 = vsub.f32 1.0, %v265_v61  ;;  %vm274_vm14 = vcmp.eq.f32.partialorder %v273_v6, 8.507059e+37  ;;  %v380_v18 = vand.u32 2147483648, %v1166_v48 }
  0xc6   :  { %782 = vmatmul.msk.f32.gmra.mxu1 %vm41_vm0, %v262_v62  ;;  %v378_v21 = vand.u32 2147483647, %v1166_v48  ;;  %vm374_vm1 = vweird.f32 %v1166_v48  ;;  %v290_v23 = vand.u32 2147483648, %v1171_v55  ;;  %v288_v26 = vand.u32 2147483647, %v1171_v55 }
  0xc7   :  { %v358_v58 = vadd.f32 %v857_v47, %v357_v0  ;;  %v267_v5 = vmul.f32 %v861_v54, %v266_v3  ;;  %v381_v27 = vor.u32 1.1754944e-38, %v380_v18  ;;  %vm284_vm5 = vweird.f32 %v1171_v55 }
  0xc8   :  { %v863_v7 = vpop.eup %862  ;;  %vm379_vm4 = vcmp.eq.f32.partialorder %v378_v21, 8.507059e+37  ;;  %v291_v30 = vor.u32 1.1754944e-38, %v290_v23  ;;  %vm289_vm7 = vcmp.eq.f32.partialorder %v288_v26, 8.507059e+37 }
  0xc9   :  { %v362_v9 = vsel %vm361_vm10, %v857_v47, %v358_v58  ;;  %v268_v2 = vadd.f32 %v861_v54, %v267_v5  ;;  %v370_v10 = vmul.f32 %v863_v7, %v1166_v48  ;;  %vm375_vm15 = vweird.f32 %v863_v7 }
  0xca   :  { %v865_v11 = vpop.eup %864  ;;  %v367_v12 = vsel %vm364_vm12, %v366_v8, %v362_v9  ;;  %vm376_vm3 = vmor %vm374_vm1, %vm375_vm15  ;;  %vm734_vm10 = vcmask 64512  }
  0xcb   :  { %v272_v14 = vsel %vm271_vm13, %v861_v54, %v268_v2  ;;  %v371_v15 = vsub.f32 1.0, %v370_v10  ;;  %v280_v16 = vmul.f32 %v865_v11, %v1171_v55  ;;  %vm285_vm2 = vweird.f32 %v865_v11 }
  0xcc   :  { %789 = vmatmul.msk.f32.gmra.mxu3 %vm41_vm0, %v367_v12  ;;  %v277_v17 = vsel %vm274_vm14, %v276_v13, %v272_v14  ;;  %vm286_vm6 = vmor %vm284_vm5, %vm285_vm2 }
  0xcd   :  { %v372_v19 = vmul.f32 %v863_v7, %v371_v15  ;;  %v281_v22 = vsub.f32 1.0, %v280_v16 }
  0xce   :  { %783 = vmatmul.msk.f32.gmra.mxu1 %vm41_vm0, %v277_v17 }
  0xcf   :  { %v373_v24 = vadd.f32 %v863_v7, %v372_v19  ;;  %v282_v25 = vmul.f32 %v865_v11, %v281_v22 }
  0xd1   :  { %v377_v28 = vsel %vm376_vm3, %v863_v7, %v373_v24  ;;  %v283_v29 = vadd.f32 %v865_v11, %v282_v25 }
  0xd2   :  { %v382_v20 = vsel %vm379_vm4, %v381_v27, %v377_v28 }
  0xd3   :  { %v287_v31 = vsel %vm286_vm6, %v865_v11, %v283_v29 }
  0xd4   :  { %790 = vmatmul.msk.f32.gmra.mxu3 %vm41_vm0, %v382_v20  ;;  %v292_v32 = vsel %vm289_vm7, %v291_v30, %v287_v31 }
  0xd6   :  { %784 = vmatmul.msk.f32.gmra.mxu1 %vm41_vm0, %v292_v32 }
 0x122   :  { %v448_v35 = vpop.f32.mrf.mxu1 }
 0x123   :  { %v449_v36 = vadd.f32 %v1199_v33, %v448_v35 }
 0x125   :  { %v791_v37 = vmul.f32 -1.442695, %v449_v36 }
 0x127   :  { %866 = vpow2.f32 %v791_v37 }
 0x12a   :  { %v451_v38 = vpop.f32.mrf.mxu1 }
 0x12b   :  { %v452_v39 = vadd.f32 %v1199_v33, %v451_v38 }
 0x12d   :  { %v867_v40 = vpop.eup %866  ;;  %v792_v41 = vmul.f32 -1.442695, %v452_v39 }
 0x12e   :  { %v526_v34 = vadd.f32 1.0, %v867_v40  ;;  %v469_v42 = vpop.f32.mrf.mxu3 }
 0x12f   :  { %868 = vpow2.f32 %v792_v41  ;;  %v470_v43 = vadd.f32 %v1199_v33, %v469_v42 }
 0x130   :  { %870 = vrcp.f32 %v526_v34  ;;  %v550_v56 = vand.u32 2147483648, %v526_v34  ;;  %v548_v60 = vand.u32 2147483647, %v526_v34  ;;  %vm544_vm8 = vweird.f32 %v526_v34 }
 0x131   :  { %v798_v44 = vmul.f32 -1.442695, %v470_v43 }
 0x132   :  { %v454_v45 = vpop.f32.mrf.mxu1  ;;  %v551_v4 = vor.u32 1.1754944e-38, %v550_v56  ;;  %vm549_vm11 = vcmp.eq.f32.partialorder %v548_v60, 8.507059e+37 }
 0x133   :  { %872 = vpow2.f32 %v798_v44  ;;  %v455_v46 = vadd.f32 %v1199_v33, %v454_v45 }
 0x135   :  { %v869_v47 = vpop.eup %868  ;;  %v793_v48 = vmul.f32 -1.442695, %v455_v46 }
 0x136   :  { %v871_v49 = vpop.eup %870  ;;  %v527_v50 = vadd.f32 1.0, %v869_v47 }
 0x137   :  { %v540_v51 = vmul.f32 %v871_v49, %v526_v34  ;;  %874 = vpow2.f32 %v793_v48  ;;  %v472_v52 = vpop.f32.mrf.mxu3  ;;  %vm545_vm0 = vweird.f32 %v871_v49 }
 0x138   :  { %876 = vrcp.f32 %v527_v50  ;;  %v473_v55 = vadd.f32 %v1199_v33, %v472_v52  ;;  %vm546_vm9 = vmor %vm544_vm8, %vm545_vm0  ;;  %v563_v12 = vand.u32 2147483647, %v527_v50  ;;  %v565_v13 = vand.u32 2147483648, %v527_v50 }
 0x139   :  { %v873_v53 = vpop.eup %872  ;;  %v541_v54 = vsub.f32 1.0, %v540_v51  ;;  %vm559_vm13 = vweird.f32 %v527_v50 }
 0x13a   :  { %v1206_v57 = vadd.f32 1.0, %v873_v53  ;;  %v799_v61 = vmul.f32 -1.442695, %v473_v55  ;;  %vm564_vm15 = vcmp.eq.f32.partialorder %v563_v12, 8.507059e+37  ;;  %v566_v27 = vor.u32 1.1754944e-38, %v565_v13 }
 0x13b   :  { %v542_v59 = vmul.f32 %v871_v49, %v541_v54  ;;  %v457_v62 = vpop.f32.mrf.mxu1 }
 0x13c   :  { %878 = vrcp.f32 %v1206_v57  ;;  %v458_v1 = vadd.f32 %v1199_v33, %v457_v62  ;;  %v653_v18 = vand.u32 2147483647, %v1206_v57  ;;  %v655_v19 = vand.u32 2147483648, %v1206_v57 }
 0x13d   :  { %v875_v63 = vpop.eup %874  ;;  %v543_v0 = vadd.f32 %v871_v49, %v542_v59  ;;  %880 = vpow2.f32 %v799_v61  ;;  %vm649_vm1 = vweird.f32 %v1206_v57 }
 0x13e   :  { %v877_v3 = vpop.eup %876  ;;  %v1210_v58 = vadd.f32 1.0, %v875_v63  ;;  %v794_v7 = vmul.f32 -1.442695, %v458_v1  ;;  %vm1227_vm3 = vcmp.eq.f32.partialorder %v653_v18, 8.507059e+37  ;;  %v656_v36 = vor.u32 1.1754944e-38, %v655_v19 }
 0x13f   :  { %v547_v5 = vsel %vm546_vm9, %v871_v49, %v543_v0  ;;  %v555_v6 = vmul.f32 %v877_v3, %v527_v50  ;;  %v475_v8 = vpop.f32.mrf.mxu3  ;;  %vm560_vm12 = vweird.f32 %v877_v3 }
 0x140   :  { %v552_v9 = vsel %vm549_vm11, %v551_v4, %v547_v5  ;;  %882 = vrcp.f32 %v1210_v58  ;;  %v476_v10 = vadd.f32 %v1199_v33, %v475_v8  ;;  %vm561_vm14 = vmor %vm559_vm13, %vm560_vm12  ;;  %v578_v41 = vand.u32 2147483647, %v1210_v58 }
 0x141   :  { %735 = vst.msk [vmem:[%s1369_s5] sm:$0xff] %vm734_vm10, %v552_v9  ;;  %v556_v2 = vsub.f32 1.0, %v555_v6  ;;  %884 = vpow2.f32 %v794_v7  ;;  %v580_v34 = vand.u32 2147483648, %v1210_v58  ;;  %vm574_vm6 = vweird.f32 %v1210_v58 }
 0x142   :  { %v879_v11 = vpop.eup %878  ;;  %v800_v24 = vmul.f32 -1.442695, %v476_v10  ;;  %vm579_vm0 = vcmp.eq.f32.partialorder %v578_v41, 8.507059e+37 }
 0x143   :  { %v881_v14 = vpop.eup %880  ;;  %v557_v15 = vmul.f32 %v877_v3, %v556_v2  ;;  %v645_v16 = vmul.f32 %v879_v11, %v1206_v57  ;;  %v460_v17 = vpop.f32.mrf.mxu1  ;;  %vm650_vm2 = vweird.f32 %v879_v11  ;;  %v581_v52 = vor.u32 1.1754944e-38, %v580_v34 }
 0x144   :  { %v1221_v21 = vadd.f32 1.0, %v881_v14  ;;  %v461_v25 = vadd.f32 %v1199_v33, %v460_v17  ;;  %vm651_vm4 = vmor %vm649_vm1, %vm650_vm2 }
 0x145   :  { %v558_v22 = vadd.f32 %v877_v3, %v557_v15  ;;  %v646_v23 = vsub.f32 1.0, %v645_v16 }
 0x146   :  { %v883_v26 = vpop.eup %882  ;;  %886 = vrcp.f32 %v1221_v21  ;;  %v795_v40 = vmul.f32 -1.442695, %v461_v25  ;;  %v668_v53 = vand.u32 2147483647, %v1221_v21  ;;  %v670_v59 = vand.u32 2147483648, %v1221_v21 }
 0x147   :  { %v885_v28 = vpop.eup %884  ;;  %v562_v29 = vsel %vm561_vm14, %v877_v3, %v558_v22  ;;  %v647_v20 = vmul.f32 %v879_v11, %v646_v23  ;;  %v570_v30 = vmul.f32 %v883_v26, %v1210_v58  ;;  %v478_v31 = vpop.f32.mrf.mxu3  ;;  %888 = vpow2.f32 %v800_v24 }
 0x148   :  { %v567_v32 = vsel %vm564_vm15, %v566_v27, %v562_v29  ;;  %v1231_v37 = vadd.f32 1.0, %v885_v28  ;;  %vm575_vm5 = vweird.f32 %v883_v26  ;;  %v479_v44 = vadd.f32 %v1199_v33, %v478_v31 }
 0x149   :  { %736 = vst.msk [vmem:[%s1369_s5 + $0x8] sm:$0xff] %vm734_vm10, %v567_v32  ;;  %v648_v38 = vadd.f32 %v879_v11, %v647_v20  ;;  %v571_v39 = vsub.f32 1.0, %v570_v30  ;;  %vm576_vm7 = vmor %vm574_vm6, %vm575_vm5  ;;  %vm664_vm9 = vweird.f32 %v1221_v21  ;;  %vm1264_vm11 = vcmp.eq.f32.partialorder %v668_v53, 8.507059e+37 }
 0x14a   :  { %890 = vrcp.f32 %v1231_v37  ;;  %v801_v51 = vmul.f32 -1.442695, %v479_v44  ;;  %v671_v2 = vor.u32 1.1754944e-38, %v670_v59  ;;  %v593_v10 = vand.u32 2147483647, %v1231_v37 }
 0x14b   :  { %v652_v42 = vsel %vm651_vm4, %v879_v11, %v648_v38  ;;  %v572_v43 = vmul.f32 %v883_v26, %v571_v39  ;;  %892 = vpow2.f32 %v795_v40  ;;  %v463_v45 = vpop.f32.mrf.mxu1  ;;  %v595_v11 = vand.u32 2147483648, %v1231_v37 }
 0x14c   :  { %v887_v46 = vpop.eup %886  ;;  %v657_v47 = vsel %vm1227_vm3, %v656_v36, %v652_v42  ;;  %v464_v48 = vadd.f32 %v1199_v33, %v463_v45  ;;  %894 = vpow2.f32 %v801_v51  ;;  %vm589_vm14 = vweird.f32 %v1231_v37 }
 0x14d   :  { %742 = vst.msk [vmem:[%s1369_s5 + $0x38] sm:$0xff] %vm734_vm10, %v657_v47  ;;  %v573_v49 = vadd.f32 %v883_v26, %v572_v43  ;;  %v660_v50 = vmul.f32 %v887_v46, %v1221_v21  ;;  %v889_v55 = vpop.eup %888  ;;  %vm665_vm8 = vweird.f32 %v887_v46  ;;  %v596_v23 = vor.u32 1.1754944e-38, %v595_v11 }
 0x14e   :  { %v796_v54 = vmul.f32 -1.442695, %v464_v48  ;;  %v1255_v63 = vadd.f32 1.0, %v889_v55  ;;  %vm666_vm12 = vmor %vm664_vm9, %vm665_vm8  ;;  %vm594_vm1 = vcmp.eq.f32.partialorder %v593_v10, 8.507059e+37 }
 0x14f   :  { %v577_v56 = vsel %vm576_vm7, %v883_v26, %v573_v49  ;;  %v661_v57 = vsub.f32 1.0, %v660_v50  ;;  %v481_v60 = vpop.f32.mrf.mxu3 }
 0x150   :  { %v891_v61 = vpop.eup %890  ;;  %v582_v62 = vsel %vm579_vm0, %v581_v52, %v577_v56  ;;  %896 = vpow2.f32 %v796_v54  ;;  %v482_v0 = vadd.f32 %v1199_v33, %v481_v60  ;;  %v683_v24 = vand.u32 2147483647, %v1255_v63 }
 0x151   :  { %v893_v1 = vpop.eup %892  ;;  %737 = vst.msk [vmem:[%s1369_s5 + $0x10] sm:$0xff] %vm734_vm10, %v582_v62  ;;  %v662_v3 = vmul.f32 %v887_v46, %v661_v57  ;;  %v585_v4 = vmul.f32 %v891_v61, %v1231_v37  ;;  %898 = vrcp.f32 %v1255_v63  ;;  %vm590_vm13 = vweird.f32 %v891_v61 }
 0x152   :  { %v1269_v7 = vadd.f32 1.0, %v893_v1  ;;  %v802_v8 = vmul.f32 -1.442695, %v482_v0  ;;  %v895_v13 = vpop.eup %894  ;;  %vm591_vm15 = vmor %vm589_vm14, %vm590_vm13  ;;  %v685_v28 = vand.u32 2147483648, %v1255_v63  ;;  %vm679_vm2 = vweird.f32 %v1255_v63 }
 0x153   :  { %v663_v5 = vadd.f32 %v887_v46, %v662_v3  ;;  %v586_v6 = vsub.f32 1.0, %v585_v4  ;;  %v466_v9 = vpop.f32.mrf.mxu1  ;;  %v1277_v18 = vadd.f32 1.0, %v895_v13  ;;  %vm1298_vm3 = vcmp.eq.f32.partialorder %v683_v24, 8.507059e+37 }
 0x154   :  { %v467_v12 = vadd.f32 %v1199_v33, %v466_v9  ;;  %900 = vrcp.f32 %v1269_v7  ;;  %v608_v20 = vand.u32 2147483647, %v1269_v7  ;;  %v610_v35 = vand.u32 2147483648, %v1269_v7 }
 0x155   :  { %v667_v14 = vsel %vm666_vm12, %v887_v46, %v663_v5  ;;  %v587_v15 = vmul.f32 %v891_v61, %v586_v6  ;;  %902 = vpow2.f32 %v802_v8  ;;  %v686_v40 = vor.u32 1.1754944e-38, %v685_v28 }
 0x156   :  { %v897_v16 = vpop.eup %896  ;;  %v672_v17 = vsel %vm1264_vm11, %v671_v2, %v667_v14  ;;  %904 = vrcp.f32 %v1277_v18  ;;  %v797_v25 = vmul.f32 -1.442695, %v467_v12  ;;  %vm604_vm5 = vweird.f32 %v1269_v7 }
 0x157   :  { %743 = vst.msk [vmem:[%s1369_s5 + $0x40] sm:$0xff] %vm734_vm10, %v672_v17  ;;  %v588_v19 = vadd.f32 %v891_v61, %v587_v15  ;;  %v1284_v21 = vadd.f32 1.0, %v897_v16  ;;  %v899_v22 = vpop.eup %898  ;;  %v484_v30 = vpop.f32.mrf.mxu3  ;;  %vm1305_vm6 = vcmp.eq.f32.partialorder %v608_v20, 8.507059e+37  ;;  %v611_v46 = vor.u32 1.1754944e-38, %v610_v35 }
 0x158   :  { %v675_v27 = vmul.f32 %v899_v22, %v1255_v63  ;;  %vm680_vm4 = vweird.f32 %v899_v22  ;;  %v485_v41 = vadd.f32 %v1199_v33, %v484_v30  ;;  %vm694_vm8 = vweird.f32 %v1277_v18 }
 0x159   :  { %v592_v26 = vsel %vm591_vm15, %v891_v61, %v588_v19  ;;  %906 = vrcp.f32 %v1284_v21  ;;  %vm681_vm7 = vmor %vm679_vm2, %vm680_vm4  ;;  %v698_v52 = vand.u32 2147483647, %v1277_v18  ;;  %v700_v57 = vand.u32 2147483648, %v1277_v18 }
 0x15a   :  { %v597_v29 = vsel %vm594_vm1, %v596_v23, %v592_v26  ;;  %v901_v31 = vpop.eup %900  ;;  %v676_v32 = vsub.f32 1.0, %v675_v27  ;;  %908 = vpow2.f32 %v797_v25  ;;  %v803_v48 = vmul.f32 -1.442695, %v485_v41 }
 0x15b   :  { %738 = vst.msk [vmem:[%s1369_s5 + $0x18] sm:$0xff] %vm734_vm10, %v597_v29  ;;  %v600_v37 = vmul.f32 %v901_v31, %v1269_v7  ;;  %v903_v38 = vpop.eup %902  ;;  %vm605_vm0 = vweird.f32 %v901_v31  ;;  %v623_v63 = vand.u32 2147483647, %v1284_v21  ;;  %v625_v0 = vand.u32 2147483648, %v1284_v21 }
 0x15c   :  { %v677_v39 = vmul.f32 %v899_v22, %v676_v32  ;;  %v905_v34 = vpop.eup %904  ;;  %v1309_v44 = vadd.f32 1.0, %v903_v38  ;;  %vm606_vm11 = vmor %vm604_vm5, %vm605_vm0  ;;  %v701_v5 = vor.u32 1.1754944e-38, %v700_v57  ;;  %vm619_vm14 = vweird.f32 %v1284_v21 }
 0x15d   :  { %v601_v42 = vsub.f32 1.0, %v600_v37  ;;  %v690_v47 = vmul.f32 %v905_v34, %v1277_v18  ;;  %vm695_vm9 = vweird.f32 %v905_v34  ;;  %vm699_vm15 = vcmp.eq.f32.partialorder %v698_v52, 8.507059e+37 }
 0x15e   :  { %v678_v45 = vadd.f32 %v899_v22, %v677_v39  ;;  %910 = vrcp.f32 %v1309_v44  ;;  %vm696_vm13 = vmor %vm694_vm8, %vm695_vm9  ;;  %v626_v2 = vor.u32 1.1754944e-38, %v625_v0  ;;  %vm624_vm2 = vcmp.eq.f32.partialorder %v623_v63, 8.507059e+37 }
 0x15f   :  { %v907_v49 = vpop.eup %906  ;;  %v602_v33 = vmul.f32 %v901_v31, %v601_v42  ;;  %v691_v51 = vsub.f32 1.0, %v690_v47  ;;  %912 = vpow2.f32 %v803_v48  ;;  %v715_v14 = vand.u32 2147483648, %v1309_v44 }
 0x160   :  { %v682_v50 = vsel %vm681_vm7, %v899_v22, %v678_v45  ;;  %v615_v53 = vmul.f32 %v907_v49, %v1284_v21  ;;  %v909_v54 = vpop.eup %908  ;;  %vm620_vm12 = vweird.f32 %v907_v49  ;;  %v713_v18 = vand.u32 2147483647, %v1309_v44 }
 0x161   :  { %v687_v55 = vsel %vm1298_vm3, %v686_v40, %v682_v50  ;;  %v603_v56 = vadd.f32 %v901_v31, %v602_v33  ;;  %v692_v59 = vmul.f32 %v905_v34, %v691_v51  ;;  %v532_v61 = vadd.f32 1.0, %v909_v54  ;;  %vm621_vm1 = vmor %vm619_vm14, %vm620_vm12 }
 0x162   :  { %744 = vst.msk [vmem:[%s1369_s5 + $0x48] sm:$0xff] %vm734_vm10, %v687_v55  ;;  %v616_v60 = vsub.f32 1.0, %v615_v53  ;;  %vm709_vm4 = vweird.f32 %v1309_v44  ;;  %v716_v22 = vor.u32 1.1754944e-38, %v715_v14 }
 0x163   :  { %v607_v62 = vsel %vm606_vm11, %v901_v31, %v603_v56  ;;  %v693_v3 = vadd.f32 %v905_v34, %v692_v59  ;;  %914 = vrcp.f32 %v532_v61  ;;  %v640_v25 = vand.u32 2147483648, %v532_v61 }
 0x164   :  { %v612_v1 = vsel %vm1305_vm6, %v611_v46, %v607_v62  ;;  %v617_v4 = vmul.f32 %v907_v49, %v616_v60  ;;  %v911_v58 = vpop.eup %910  ;;  %vm714_vm6 = vcmp.eq.f32.partialorder %v713_v18, 8.507059e+37  ;;  %v638_v28 = vand.u32 2147483647, %v532_v61 }
 0x165   :  { %739 = vst.msk [vmem:[%s1369_s5 + $0x20] sm:$0xff] %vm734_vm10, %v612_v1  ;;  %v697_v6 = vsel %vm696_vm13, %v905_v34, %v693_v3  ;;  %v705_v8 = vmul.f32 %v911_v58, %v1309_v44  ;;  %v913_v10 = vpop.eup %912  ;;  %vm710_vm3 = vweird.f32 %v911_v58  ;;  %vm634_vm0 = vweird.f32 %v532_v61 }
 0x166   :  { %v618_v7 = vadd.f32 %v907_v49, %v617_v4  ;;  %v702_v9 = vsel %vm699_vm15, %v701_v5, %v697_v6  ;;  %v538_v15 = vadd.f32 1.0, %v913_v10  ;;  %vm711_vm5 = vmor %vm709_vm4, %vm710_vm3  ;;  %v641_v30 = vor.u32 1.1754944e-38, %v640_v25 }
 0x167   :  { %745 = vst.msk [vmem:[%s1369_s5 + $0x50] sm:$0xff] %vm734_vm10, %v702_v9  ;;  %v706_v12 = vsub.f32 1.0, %v705_v8  ;;  %vm639_vm9 = vcmp.eq.f32.partialorder %v638_v28, 8.507059e+37 }
 0x168   :  { %v622_v11 = vsel %vm621_vm1, %v907_v49, %v618_v7  ;;  %916 = vrcp.f32 %v538_v15  ;;  %v730_v37 = vand.u32 2147483648, %v538_v15  ;;  %v728_v39 = vand.u32 2147483647, %v538_v15 }
 0x169   :  { %v627_v13 = vsel %vm624_vm2, %v626_v2, %v622_v11  ;;  %v915_v16 = vpop.eup %914  ;;  %v707_v17 = vmul.f32 %v911_v58, %v706_v12  ;;  %vm724_vm12 = vweird.f32 %v538_v15 }
 0x16a   :  { %740 = vst.msk [vmem:[%s1369_s5 + $0x28] sm:$0xff] %vm734_vm10, %v627_v13  ;;  %v630_v19 = vmul.f32 %v915_v16, %v532_v61  ;;  %vm635_vm7 = vweird.f32 %v915_v16  ;;  %v731_v41 = vor.u32 1.1754944e-38, %v730_v37  ;;  %vm729_vm14 = vcmp.eq.f32.partialorder %v728_v39, 8.507059e+37 }
 0x16b   :  { %v708_v21 = vadd.f32 %v911_v58, %v707_v17  ;;  %vm636_vm8 = vmor %vm634_vm0, %vm635_vm7 }
 0x16c   :  { %v631_v23 = vsub.f32 1.0, %v630_v19 }
 0x16d   :  { %v712_v24 = vsel %vm711_vm5, %v911_v58, %v708_v21 }
 0x16e   :  { %v717_v26 = vsel %vm714_vm6, %v716_v22, %v712_v24  ;;  %v632_v27 = vmul.f32 %v915_v16, %v631_v23  ;;  %v917_v29 = vpop.eup %916 }
 0x16f   :  { %746 = vst.msk [vmem:[%s1369_s5 + $0x58] sm:$0xff] %vm734_vm10, %v717_v26  ;;  %v720_v31 = vmul.f32 %v917_v29, %v538_v15  ;;  %vm725_vm11 = vweird.f32 %v917_v29 }
 0x170   :  { %v633_v20 = vadd.f32 %v915_v16, %v632_v27  ;;  %vm726_vm13 = vmor %vm724_vm12, %vm725_vm11 }
 0x171   :  { %v721_v36 = vsub.f32 1.0, %v720_v31 }
 0x172   :  { %v637_v32 = vsel %vm636_vm8, %v915_v16, %v633_v20 }
 0x173   :  { %v642_v35 = vsel %vm639_vm9, %v641_v30, %v637_v32  ;;  %v722_v38 = vmul.f32 %v917_v29, %v721_v36 }
 0x174   :  { %741 = vst.msk [vmem:[%s1369_s5 + $0x30] sm:$0xff] %vm734_vm10, %v642_v35 }
 0x175   :  { %v723_v40 = vadd.f32 %v917_v29, %v722_v38 }
 0x177   :  { %v727_v34 = vsel %vm726_vm13, %v917_v29, %v723_v40 }
 0x178   :  { %v732_v42 = vsel %vm729_vm14, %v731_v41, %v727_v34 }
 0x179   :  { %747 = vst.msk [vmem:[%s1369_s5 + $0x60] sm:$0xff] %vm734_vm10, %v732_v42 }

</bundles_post_ra>
